<compile_context>
chip_gen: v7x
topology: tpu7x:2x2x1
jax: 0.10.0
libtpu: 0.0.40
codegen_flags: <defaults>
</compile_context>

<pallas_src>
import jax
import jax.numpy as jnp
from jax.experimental import pallas as pl
from jax.experimental.pallas import tpu as pltpu


def _ieblock_kernel(x_ref, w1_ref, b1_ref, w2_ref, b2_ref,
                    wc_ref, bc_ref, wo_ref, bo_ref, o_ref):
    bt, n_node, d_in = x_ref.shape
    hid4 = w2_ref.shape[1]

    # Fold (Bt, N) -> M for the row-wise matmuls.
    x = x_ref[...].reshape(bt * n_node, d_in)                       # (M, D_in)

    # spatial_proj: Linear(D_in -> hid) + LeakyReLU(0.01) + Linear(hid -> hid//4)
    h1 = jnp.dot(x, w1_ref[...],
                 preferred_element_type=jnp.float32) + b1_ref[...]  # (M, hid)
    h1 = jnp.maximum(h1, jnp.float32(0.01) * h1)                    # LeakyReLU
    h2 = jnp.dot(h1, w2_ref[...],
                 preferred_element_type=jnp.float32) + b2_ref[...]  # (M, hid//4)

    # channel_proj mixes across nodes (wc_ref already holds I + Wc):
    #   z_b = (I + Wc) @ h2_b + bc[:, None]
    h2_3d = h2.reshape(bt, n_node, hid4)
    wc_b = jnp.broadcast_to(wc_ref[...], (bt, n_node, n_node))
    z = jnp.einsum('bnm,bmh->bnh', wc_b, h2_3d,
                   preferred_element_type=jnp.float32)
    z = z + bc_ref[...][None, :, :]                                 # bc: (N, 1)

    # output_proj: Linear(hid//4 -> d_out), weight padded to lane-dense width.
    z2d = z.reshape(bt * n_node, hid4)
    out = jnp.dot(z2d, wo_ref[...],
                  preferred_element_type=jnp.float32) + bo_ref[...]  # (M, d_out_p)

    o_ref[...] = out.astype(o_ref.dtype)


def ieblock_forward(x, params, bt=None):
    """x: (B, input_dim, num_node) -> (B, output_dim, num_node)."""
    w1, b1, w2, b2, wc, bc, wo, bo = params
    B, d_in, n_node = x.shape
    hid = w1.shape[0]
    hid4 = w2.shape[0]
    d_out = wo.shape[0]

    # Lane-dense padded output width (multiple of 128).
    d_out_p = -(-d_out // 128) * 128

    # Batch block: whole batch per grid step by default (toy sizes).
    # On v7x, pick bt so 2+ grid steps exist (2 TCs) and the (bt*N, hid) f32
    # intermediates stay well under the 32 MiB scoped VMEM limit.
    if bt is None:
        bt = B
    assert B % bt == 0, "batch must be divisible by the batch block"
    nb = B // bt

    # Trace-time layout & algebraic prep (done once, in HBM):
    x_nf = jnp.transpose(x, (0, 2, 1))                     # (B, N, D_in)
    w1_t = jnp.transpose(w1)                               # (D_in, hid)
    w2_t = jnp.transpose(w2)                               # (hid, hid//4)
    wo_t = jnp.zeros((hid4, d_out_p), wo.dtype).at[:, :d_out].set(jnp.transpose(wo))
    bo_p = jnp.zeros((1, d_out_p), bo.dtype).at[:, :d_out].set(bo.reshape(1, d_out))
    wc_plus = wc + jnp.eye(n_node, dtype=wc.dtype)         # fold "h2 + mix"
    b1_2d = b1.reshape(1, hid)
    b2_2d = b2.reshape(1, hid4)
    bc_2d = bc.reshape(n_node, 1)

    full2 = lambda i: (0, 0)

    out2d = pl.pallas_call(
        _ieblock_kernel,
        out_shape=jax.ShapeDtypeStruct((B * n_node, d_out_p), x.dtype),
        grid_spec=pltpu.PrefetchScalarGridSpec(
            num_scalar_prefetch=0,
            grid=(nb,),
            in_specs=[
                pl.BlockSpec((bt, n_node, d_in), lambda i: (i, 0, 0)),
                pl.BlockSpec((d_in, hid), full2),
                pl.BlockSpec((1, hid), full2),
                pl.BlockSpec((hid, hid4), full2),
                pl.BlockSpec((1, hid4), full2),
                pl.BlockSpec((n_node, n_node), full2),
                pl.BlockSpec((n_node, 1), full2),
                pl.BlockSpec((hid4, d_out_p), full2),
                pl.BlockSpec((1, d_out_p), full2),
            ],
            out_specs=pl.BlockSpec((bt * n_node, d_out_p), lambda i: (i, 0)),
        ),
        compiler_params=pltpu.CompilerParams(
            dimension_semantics=("parallel",)),
    )(x_nf, w1_t, b1_2d, w2_t, b2_2d, wc_plus, bc_2d, wo_t, bo_p)

    # Slice off the lane padding, back to PyTorch output layout (B, d_out, N).
    out = out2d[:, :d_out].reshape(B, n_node, d_out)
    return jnp.transpose(out, (0, 2, 1))


def _reference(x, params):
    """Pure-JAX reference mirroring the PyTorch forward exactly."""
    w1, b1, w2, b2, wc, bc, wo, bo = params
    xt = jnp.transpose(x, (0, 2, 1))                      # (B, N, D_in)
    h = xt @ w1.T + b1
    h = jnp.where(h >= 0, h, 0.01 * h)
    h = h @ w2.T + b2                                     # (B, N, hid//4)
    ht = jnp.transpose(h, (0, 2, 1))                      # (B, hid//4, N)
    z = ht + (ht @ wc.T + bc)                             # (B, hid//4, N)
    y = jnp.transpose(z, (0, 2, 1)) @ wo.T + bo           # (B, N, D_out)
    return jnp.transpose(y, (0, 2, 1))                    # (B, D_out, N)


def init_params(key, input_dim, hid_dim, output_dim, num_node, random_wc=False):
    hid4 = hid_dim // 4
    ks = jax.random.split(key, 8)
    scale = 0.1
    w1 = scale * jax.random.normal(ks[0], (hid_dim, input_dim), jnp.float32)
    b1 = scale * jax.random.normal(ks[1], (hid_dim,), jnp.float32)
    w2 = scale * jax.random.normal(ks[2], (hid4, hid_dim), jnp.float32)
    b2 = scale * jax.random.normal(ks[3], (hid4,), jnp.float32)
    if random_wc:
        wc = scale * jax.random.normal(ks[7], (num_node, num_node), jnp.float32)
    else:
        # channel_proj weight is initialized with torch.nn.init.eye_
        wc = jnp.eye(num_node, dtype=jnp.float32)
    bc = scale * jax.random.normal(ks[4], (num_node,), jnp.float32)
    wo = scale * jax.random.normal(ks[5], (output_dim, hid4), jnp.float32)
    bo = scale * jax.random.normal(ks[6], (output_dim,), jnp.float32)
    return (w1, b1, w2, b2, wc, bc, wo, bo)


if __name__ == "__main__":
    B, input_dim, hid_dim, output_dim, num_node = 2, 16, 32, 12, 8

    key = jax.random.PRNGKey(0)
    kx, kp = jax.random.split(key)
    x = jax.random.normal(kx, (B, input_dim, num_node), jnp.float32)

    # Check 1: PyTorch-style init (channel_proj weight = eye).
    params = init_params(kp, input_dim, hid_dim, output_dim, num_node)
    out = jax.block_until_ready(ieblock_forward(x, params))
    ref = _reference(x, params)
    assert out.shape == (B, output_dim, num_node)
    assert jnp.allclose(out, ref, atol=1e-4, rtol=1e-4), "mismatch vs reference (eye wc)"

    # Check 2: random channel_proj weight, so the channel mix is non-trivially
    # exercised (addresses reviewer correctness concern).
    params_r = init_params(kp, input_dim, hid_dim, output_dim, num_node, random_wc=True)
    out_r = jax.block_until_ready(ieblock_forward(x, params_r))
    ref_r = _reference(x, params_r)
    assert jnp.allclose(out_r, ref_r, atol=1e-4, rtol=1e-4), "mismatch vs reference (random wc)"

    print("KERNEL_OK")
</pallas_src>

<mosaic_0001>
module attributes {stable_mosaic.version = 11 : i64} {
  func.func @_ieblock_kernel(%arg0: i32, %arg1: memref<2x8x16xf32, #tpu.memory_space<vmem>>, %arg2: memref<16x32xf32, #tpu.memory_space<vmem>>, %arg3: memref<1x32xf32, #tpu.memory_space<vmem>>, %arg4: memref<32x8xf32, #tpu.memory_space<vmem>>, %arg5: memref<1x8xf32, #tpu.memory_space<vmem>>, %arg6: memref<8x8xf32, #tpu.memory_space<vmem>>, %arg7: memref<8x1xf32, #tpu.memory_space<vmem>>, %arg8: memref<8x128xf32, #tpu.memory_space<vmem>>, %arg9: memref<1x128xf32, #tpu.memory_space<vmem>>, %arg10: memref<16x128xf32, #tpu.memory_space<vmem>>) attributes {dimension_semantics = [#tpu.dimension_semantics<parallel>], iteration_bounds = array<i64: 1>, scalar_prefetch = 0 : i64, scratch_operands = 0 : i64, tpu.core_type = #tpu.core_type<tc>, window_params = [{transform_indices = @transform_0, window_bounds = array<i64: 2, 8, 16>}, {pipeline_mode = #tpu.pipeline_mode<synchronous>, transform_indices = @transform_1, window_bounds = array<i64: 16, 32>}, {pipeline_mode = #tpu.pipeline_mode<synchronous>, transform_indices = @transform_2, window_bounds = array<i64: 1, 32>}, {pipeline_mode = #tpu.pipeline_mode<synchronous>, transform_indices = @transform_3, window_bounds = array<i64: 32, 8>}, {pipeline_mode = #tpu.pipeline_mode<synchronous>, transform_indices = @transform_4, window_bounds = array<i64: 1, 8>}, {pipeline_mode = #tpu.pipeline_mode<synchronous>, transform_indices = @transform_5, window_bounds = array<i64: 8, 8>}, {pipeline_mode = #tpu.pipeline_mode<synchronous>, transform_indices = @transform_6, window_bounds = array<i64: 8, 1>}, {pipeline_mode = #tpu.pipeline_mode<synchronous>, transform_indices = @transform_7, window_bounds = array<i64: 8, 128>}, {pipeline_mode = #tpu.pipeline_mode<synchronous>, transform_indices = @transform_8, window_bounds = array<i64: 1, 128>}, {transform_indices = @transform_9, window_bounds = array<i64: 16, 128>}]} {
    %c0 = arith.constant 0 : index
    %c0_0 = arith.constant 0 : index
    %c0_1 = arith.constant 0 : index
    %0 = vector.load %arg1[%c0, %c0_0, %c0_1] : memref<2x8x16xf32, #tpu.memory_space<vmem>>, vector<2x8x16xf32>
    %1 = vector.shape_cast %0 : vector<2x8x16xf32> to vector<16x16xf32>
    %c0_2 = arith.constant 0 : index
    %c0_3 = arith.constant 0 : index
    %2 = vector.load %arg2[%c0_2, %c0_3] : memref<16x32xf32, #tpu.memory_space<vmem>>, vector<16x32xf32>
    %cst = arith.constant dense<0.000000e+00> : vector<16x32xf32>
    %3 = tpu.matmul %1, %2, %cst {dimension_numbers = #tpu.dot_dimension_numbers<[1], [0], [0], [1], [0, 0, 1, 1], [], []>} : vector<16x16xf32>, vector<16x32xf32>, vector<16x32xf32> -> vector<16x32xf32>
    %c0_4 = arith.constant 0 : index
    %c0_5 = arith.constant 0 : index
    %4 = vector.load %arg3[%c0_4, %c0_5] : memref<1x32xf32, #tpu.memory_space<vmem>>, vector<1x32xf32>
    %5 = vector.broadcast %4 : vector<1x32xf32> to vector<16x32xf32>
    %6 = arith.addf %3, %5 : vector<16x32xf32>
    %cst_6 = arith.constant 0.00999999977 : f32
    %7 = vector.broadcast %cst_6 : f32 to vector<16x32xf32>
    %8 = arith.mulf %7, %6 : vector<16x32xf32>
    %9 = arith.maximumf %6, %8 : vector<16x32xf32>
    %c0_7 = arith.constant 0 : index
    %c0_8 = arith.constant 0 : index
    %10 = vector.load %arg4[%c0_7, %c0_8] : memref<32x8xf32, #tpu.memory_space<vmem>>, vector<32x8xf32>
    %cst_9 = arith.constant dense<0.000000e+00> : vector<16x8xf32>
    %11 = tpu.matmul %9, %10, %cst_9 {dimension_numbers = #tpu.dot_dimension_numbers<[1], [0], [0], [1], [0, 0, 1, 1], [], []>} : vector<16x32xf32>, vector<32x8xf32>, vector<16x8xf32> -> vector<16x8xf32>
    %c0_10 = arith.constant 0 : index
    %c0_11 = arith.constant 0 : index
    %12 = vector.load %arg5[%c0_10, %c0_11] : memref<1x8xf32, #tpu.memory_space<vmem>>, vector<1x8xf32>
    %13 = vector.broadcast %12 : vector<1x8xf32> to vector<16x8xf32>
    %14 = arith.addf %11, %13 : vector<16x8xf32>
    %15 = vector.shape_cast %14 : vector<16x8xf32> to vector<2x8x8xf32>
    %c0_12 = arith.constant 0 : index
    %c0_13 = arith.constant 0 : index
    %16 = vector.load %arg6[%c0_12, %c0_13] : memref<8x8xf32, #tpu.memory_space<vmem>>, vector<8x8xf32>
    %17 = vector.shape_cast %16 : vector<8x8xf32> to vector<1x8x8xf32>
    %18 = vector.broadcast %17 : vector<1x8x8xf32> to vector<2x8x8xf32>
    "tpu.trace_start"() <{level = 10 : i32, message = "bnm,bmh->bnh"}> : () -> ()
    %cst_14 = arith.constant dense<0.000000e+00> : vector<2x8x8xf32>
    %19 = tpu.matmul %18, %15, %cst_14 {dimension_numbers = #tpu.dot_dimension_numbers<[2], [1], [1], [2], [0, 0, 0, 1, 1, 2], [0], [0]>} : vector<2x8x8xf32>, vector<2x8x8xf32>, vector<2x8x8xf32> -> vector<2x8x8xf32>
    "tpu.trace_stop"() : () -> ()
    %c0_15 = arith.constant 0 : index
    %c0_16 = arith.constant 0 : index
    %20 = vector.load %arg7[%c0_15, %c0_16] : memref<8x1xf32, #tpu.memory_space<vmem>>, vector<8x1xf32>
    %21 = vector.shape_cast %20 : vector<8x1xf32> to vector<1x8x1xf32>
    %22 = vector.broadcast %21 : vector<1x8x1xf32> to vector<2x8x8xf32>
    %23 = arith.addf %19, %22 : vector<2x8x8xf32>
    %24 = vector.shape_cast %23 : vector<2x8x8xf32> to vector<16x8xf32>
    %c0_17 = arith.constant 0 : index
    %c0_18 = arith.constant 0 : index
    %25 = vector.load %arg8[%c0_17, %c0_18] : memref<8x128xf32, #tpu.memory_space<vmem>>, vector<8x128xf32>
    %cst_19 = arith.constant dense<0.000000e+00> : vector<16x128xf32>
    %26 = tpu.matmul %24, %25, %cst_19 {dimension_numbers = #tpu.dot_dimension_numbers<[1], [0], [0], [1], [0, 0, 1, 1], [], []>} : vector<16x8xf32>, vector<8x128xf32>, vector<16x128xf32> -> vector<16x128xf32>
    %c0_20 = arith.constant 0 : index
    %c0_21 = arith.constant 0 : index
    %27 = vector.load %arg9[%c0_20, %c0_21] : memref<1x128xf32, #tpu.memory_space<vmem>>, vector<1x128xf32>
    %28 = vector.broadcast %27 : vector<1x128xf32> to vector<16x128xf32>
    %29 = arith.addf %26, %28 : vector<16x128xf32>
    %c0_22 = arith.constant 0 : index
    %c0_23 = arith.constant 0 : index
    %30 = vector.load %arg10[%c0_22, %c0_23] : memref<16x128xf32, #tpu.memory_space<vmem>>, vector<16x128xf32>
    tpu.vector_store %arg10[%c0_22, %c0_23], %29 {strides = array<i32>} : memref<16x128xf32, #tpu.memory_space<vmem>>, vector<16x128xf32>,
    return
  }
  func.func @transform_0(%arg0: i32) -> (i32, i32, i32) {
    %c0_i32 = arith.constant 0 : i32
    %c0_i32_0 = arith.constant 0 : i32
    %c0_i32_1 = arith.constant 0 : i32
    return %arg0, %c0_i32, %c0_i32_0 : i32, i32, i32
  }
  func.func @transform_1(%arg0: i32) -> (i32, i32) {
    %c0_i32 = arith.constant 0 : i32
    %c0_i32_0 = arith.constant 0 : i32
    %c0_i32_1 = arith.constant 0 : i32
    return %c0_i32, %c0_i32_0 : i32, i32
  }
  func.func @transform_2(%arg0: i32) -> (i32, i32) {
    %c0_i32 = arith.constant 0 : i32
    %c0_i32_0 = arith.constant 0 : i32
    %c0_i32_1 = arith.constant 0 : i32
    return %c0_i32, %c0_i32_0 : i32, i32
  }
  func.func @transform_3(%arg0: i32) -> (i32, i32) {
    %c0_i32 = arith.constant 0 : i32
    %c0_i32_0 = arith.constant 0 : i32
    %c0_i32_1 = arith.constant 0 : i32
    return %c0_i32, %c0_i32_0 : i32, i32
  }
  func.func @transform_4(%arg0: i32) -> (i32, i32) {
    %c0_i32 = arith.constant 0 : i32
    %c0_i32_0 = arith.constant 0 : i32
    %c0_i32_1 = arith.constant 0 : i32
    return %c0_i32, %c0_i32_0 : i32, i32
  }
  func.func @transform_5(%arg0: i32) -> (i32, i32) {
    %c0_i32 = arith.constant 0 : i32
    %c0_i32_0 = arith.constant 0 : i32
    %c0_i32_1 = arith.constant 0 : i32
    return %c0_i32, %c0_i32_0 : i32, i32
  }
  func.func @transform_6(%arg0: i32) -> (i32, i32) {
    %c0_i32 = arith.constant 0 : i32
    %c0_i32_0 = arith.constant 0 : i32
    %c0_i32_1 = arith.constant 0 : i32
    return %c0_i32, %c0_i32_0 : i32, i32
  }
  func.func @transform_7(%arg0: i32) -> (i32, i32) {
    %c0_i32 = arith.constant 0 : i32
    %c0_i32_0 = arith.constant 0 : i32
    %c0_i32_1 = arith.constant 0 : i32
    return %c0_i32, %c0_i32_0 : i32, i32
  }
  func.func @transform_8(%arg0: i32) -> (i32, i32) {
    %c0_i32 = arith.constant 0 : i32
    %c0_i32_0 = arith.constant 0 : i32
    %c0_i32_1 = arith.constant 0 : i32
    return %c0_i32, %c0_i32_0 : i32, i32
  }
  func.func @transform_9(%arg0: i32) -> (i32, i32) {
    %c0_i32 = arith.constant 0 : i32
    %c0_i32_0 = arith.constant 0 : i32
    return %arg0, %c0_i32 : i32, i32
  }
}

</mosaic_0001>

<bundles_post_ra>
// kernel: tpu_custom_call.1
= control target key start
LH: loop header
LB: loop body
LE: loop exit
PB: predicated region body
PF: predicated region fallthrough
CT: control target
= control target key end

     0   :  { %14 = vsyncpa [#allocation3], 0  ;;  %s749_s0 = inlined_call_operand.vmem [shape: f32[2,8,16], index: 0, kind: input, shape index: {}]   ;;  %s750_s1 = inlined_call_operand.vmem [shape: f32[16,32], index: 1, kind: input, shape index: {}]   ;;  %s751_s2 = inlined_call_operand.hbm [shape: f32[1,32], index: 2, kind: input, shape index: {}]   ;;  %s752_s3 = inlined_call_operand.vmem [shape: f32[32,8], index: 3, kind: input, shape index: {}]   ;;  %s753_s4 = inlined_call_operand.vmem [shape: f32[1,8], index: 4, kind: input, shape index: {}]   ;;  %s754_s5 = inlined_call_operand.vmem [shape: f32[8,8], index: 5, kind: input, shape index: {}]   ;;  %s755_s6 = inlined_call_operand.vmem [shape: f32[8,1], index: 6, kind: input, shape index: {}]   ;;  %s756_s7 = inlined_call_operand.vmem [shape: f32[8,128], index: 7, kind: input, shape index: {}]   ;;  %s757_s8 = inlined_call_operand.vmem [shape: f32[1,128], index: 8, kind: input, shape index: {}]   ;;  %s758_s9 = inlined_call_operand.hbm [shape: f32[16,128], index: 9, kind: output, shape index: {}]  }
   0x1   :  { %15 = vsyncpa [#allocation4], 0  ;;  %s623_s30 = smov [#allocation2]   ;;  %s575_s13 = scalar_lea.hbm %s751_s2, 16 }
   0x2   :  { %s26_s10 = sshll.u32 %s623_s30, 4  ;;  %p576_p0 = scmp.ne.s32.totalorder %s751_s2, %s575_s13  ;;  %s27_s10 = int_to_ptr.vmem [resolvable:$true] %s26_s10 }
   0x3   :  { %p579_p1 = scmp.lt.u32.totalorder %s575_s13, %s751_s2 }
   0x5   :  { %p581_p2 = pnand %p579_p1, %p576_p0 }
   0x7   :  { %584 = shalt.err (!%p581_p2)
}
   0x8   :  { %s585_s18 = scalar_lea.vmem %s27_s10, 16  ;;  %s589_s19 = scalar_lea.vmem %s27_s10, 32 }
   0x9   :  { %p586_p3 = scmp.ne.s32.totalorder %s27_s10, %s585_s18  ;;  %p590_p4 = scmp.lt.s32.totalorder %s27_s10, %s27_s10 }
   0xa   :  { %p591_p5 = scmp.lt.s32.totalorder %s589_s19, %s585_s18 }
   0xc   :  { %p592_p6 = por %p591_p5, %p590_p4 }
   0xe   :  { %p593_p7 = pnand %p592_p6, %p586_p3 }
  0x10   :  { %596 = shalt.err (!%p593_p7)
}
  0x11   :  { %29 = dma.hbm_to_vmem [thread:$0]  %s751_s2, 16, %s27_s10, [#allocation3]  }
  0x12   :  { %619 = dma.done.wait [#allocation3], 16  }
  0x13   :  { %620 = vsyncadd [#allocation3], 4294967280  ;;  %vm56_vm0 = vcmask 130048   ;;  %v47_v0 = vld [vmem:[%s750_s1] sm:$0xff]  ;;  %v48_v1 = vld [vmem:[%s750_s1 + $0x8] sm:$0xff]  ;;  %vm153_vm1 = vcmask 261120  }
  0x14   :  { %v45_v2 = vld [vmem:[%s749_s0] sm:$0xff]  ;;  %v555_v3 = vpack.c.bf16 %v48_v1, %v47_v0  ;;  %v46_v4 = vld [vmem:[%s749_s0 + $0x8] sm:$0xff]  ;;  %v144_v8 = vld [vmem:[%s752_s3 + $0x10] sm:$0xff]  ;;  %v624_v20 = vmov 0.0   ;;  %vm625_vm2 = vmmov 0   ;;  %v626_v22 = vmov 0  }
  0x15   :  { %526 = vmatprep.mubr.msk.f32.mxu0 %vm56_vm0, %v45_v2  ;;  %v142_v5 = vld [vmem:[%s752_s3] sm:$0xff]  ;;  %v143_v6 = vld [vmem:[%s752_s3 + $0x8] sm:$0xff]  ;;  %v145_v9 = vld [vmem:[%s752_s3 + $0x18] sm:$0xff]  ;;  %574 = vset.pattern.permute.xlu0 %v626_v22  ;;  %vm242_vm3 = vcmask 64512   ;;  %s627_s20 = smov [#allocation5]  }
  0x16   :  { %556 = vmatprep.subr.bf16.mxu0 %v555_v3  ;;  %v559_v7 = vpack.c.bf16 %v143_v6, %v142_v5  ;;  %v563_v10 = vpack.c.bf16 %v145_v9, %v144_v8  ;;  %v494_v11 = vld [vmem:[#allocation2] ss:$0 sm:$0xff]  ;;  %s482_s21 = sshll.u32 %s627_s20, 4  ;;  %s483_s21 = int_to_ptr.vmem [resolvable:$true] %s482_s21 }
  0x17   :  { %558 = vmatpush3.bf16.msra.mxu0 %v555_v3  ;;  %v236_v21 = vld [vmem:[%s755_s6] sm:$0xff]  ;;  %p602_p9 = scmp.lt.s32.totalorder %s483_s21, %s483_s21 }
  0x18   :  { %560 = vmatprep.subr.bf16.mxu1 %v559_v7  ;;  %540 = vmatprep.subr.mxu0 %v624_v20  ;;  %v497_v23 = vld [vmem:[%s753_s4] ss:$0 sm:$0xff] }
  0x19   :  { %562 = vmatpush3.bf16.msra.mxu1 %v559_v7  ;;  %239 = vperm.xlu0 %574, %v236_v21   ;;  %v235_v27 = vld [vmem:[%s754_s5] sm:$0xff] }
  0x1a   :  { %527 = vmatmul.mubr.msk.f32.vlgmr.msra.gmra.mrb[0].mxu0 %vm56_vm0, %v46_v4  ;;  %564 = vmatprep.subr.bf16.mxu1 %v563_v10  ;;  %v386_v29 = vld [vmem:[%s756_s7] sm:$0xff]  ;;  %s597_s7 = scalar_lea.vmem %s483_s21, 256 }
  0x1b   :  { %542 = vmatprep.mubr.msk.f32.mxu0 %vm625_vm2, %v624_v20  ;;  %v502_v37 = vld [vmem:[%s757_s8] ss:$0 sm:$0xff]  ;;  %p598_p8 = scmp.ne.s32.totalorder %s483_s21, %s597_s7  ;;  %p603_p10 = scmp.lt.s32.totalorder %s597_s7, %s597_s7 }
  0x1d   :  { %566 = vmatpush3.bf16.msra.mxu1 %v563_v10  ;;  %p604_p11 = por %p603_p10, %p602_p9 }
  0x1e   :  { %550 = vmatprep.subr.mxu1 %v386_v29 }
  0x1f   :  { %p605_p12 = pnand %p604_p11, %p598_p8 }
  0x98   :  { %v240_v30 = vpop.permute.xlu0 %239 }
  0xed   :  { %v528_v12 = vpop.f32.mrb[0].mxu0 }
  0xee   :  { %v135_v13 = vadd.f32 %v528_v12, %v494_v11  ;;  %v129_v14 = vpop.f32.mrb[1].mxu0 }
  0xef   :  { %v130_v15 = vadd.f32 %v494_v11, %v129_v14 }
  0xf0   :  { %v139_v16 = vmul.f32 0.01, %v135_v13 }
  0xf1   :  { %v138_v17 = vmul.f32 0.01, %v130_v15 }
  0xf2   :  { %v141_v19 = vmax.f32 %v135_v13, %v139_v16 }
  0xf3   :  { %v140_v18 = vmax.f32 %v130_v15, %v138_v17 }
  0xf5   :  { %537 = vmatprep.mubr.msk.f32.mxu1 %vm153_vm1, %v140_v18 }
  0xf6   :  { %538 = vmatmul.mubr.msk.f32.vlgmr.msra.gmra.mrb[0].mxu1 %vm153_vm1, %v141_v19 }
  0xf7   :  { %551 = vmatpush3.msra.mxu1 %v386_v29 }
 0x1c9   :  { %v539_v24 = vpop.f32.mrb[0].mxu1 }
 0x1ca   :  { %v226_v25 = vpop.f32.mrb[1].mxu1  ;;  %v232_v28 = vadd.f32 %v539_v24, %v497_v23 }
 0x1cb   :  { %v227_v26 = vadd.f32 %v497_v23, %v226_v25 }
 0x1cd   :  { %541 = vmatpush3.msra.mxu0 %v227_v26 }
 0x1ce   :  { %545 = vmatprep.subr.mxu0 %v624_v20  ;;  %543 = vmatmul.mubr.msk.f32.vlgmr.msra.gmra.mrb[2].mxu0 %vm242_vm3, %v235_v27 }
 0x1cf   :  { %546 = vmatpush3.msra.mxu0 %v232_v28  ;;  %547 = vmatprep.mubr.msk.f32.mxu0 %vm625_vm2, %v624_v20 }
 0x1d2   :  { %548 = vmatmul.mubr.msk.f32.vlgmr.msra.gmra.mrb[4].mxu0 %vm242_vm3, %v235_v27 }
 0x2a1   :  { %v312_v31 = vpop.f32.mrb[2].mxu0 }
 0x2a2   :  { %v313_v32 = vadd.f32 %v312_v31, %v240_v30  ;;  %v544_v33 = vpop.f32.mrb[3].mxu0 }
 0x2a4   :  { %552 = vmatprep.mubr.msk.f32.mxu1 %vm242_vm3, %v313_v32 }
 0x2a5   :  { %v382_v34 = vpop.f32.mrb[4].mxu0 }
 0x2a6   :  { %v383_v35 = vadd.f32 %v382_v34, %v240_v30  ;;  %v549_v36 = vpop.f32.mrb[5].mxu0 }
 0x2a8   :  { %553 = vmatmul.mubr.msk.f32.vlgmr.msra.gmra.mrb[2].mxu1 %vm242_vm3, %v383_v35 }
 0x37b   :  { %v554_v38 = vpop.f32.mrb[2].mxu1 }
 0x37c   :  { %v472_v39 = vadd.f32 %v554_v38, %v502_v37  ;;  %v466_v40 = vpop.f32.mrb[3].mxu1 }
 0x37d   :  { %v467_v41 = vadd.f32 %v502_v37, %v466_v40 }
 0x37e   :  { %476 = vst [vmem:[#allocation5 + $0x8] sm:$0xff] %v472_v39 }
 0x37f   :  { %475 = vst [vmem:[#allocation5] sm:$0xff] %v467_v41 }
 0x380   :  { %608 = shalt.err (!%p605_p12)
}
 0x381   :  { %s609_s8 = scalar_lea.hbm %s758_s9, 256 }
 0x382   :  { %p610_p13 = scmp.ne.s32.totalorder %s758_s9, %s609_s8  ;;  %p613_p0 = scmp.lt.u32.totalorder %s609_s8, %s758_s9 }
 0x384   :  { %p615_p1 = pnand %p613_p0, %p610_p13 }
 0x386   :  { %618 = shalt.err (!%p615_p1)
}
 0x387   :  { %s628_s2 = smov 128   ;;  %s629_s28 = smov 8  }
 0x388   :  { %488 = dma.vmem_to_hbm [thread:$0]  %s483_s21, 256, %s758_s9, [#allocation4], %s628_s2, %s628_s2, %s629_s28  }
 0x389   :  { %621 = dma.done.wait [#allocation4], 256  }
 0x38a   :  { %622 = vsyncadd [#allocation4], 4294967040 }
 0x38b   :  { %492 = vsyncpa [#allocation3], 1 }
 0x38c   :  { %493 = vsyncpa [#allocation4], 1 }

</bundles_post_ra>
